<compile_context>
chip_gen: v6e
topology: v6e:2x2x1
jax: 0.10.0
libtpu: 0.0.40
codegen_flags: <defaults>
</compile_context>

<pallas_src>
import functools
import math
from types import SimpleNamespace

import jax
import jax.numpy as jnp
from jax.experimental import pallas as pl
from jax.experimental.pallas import tpu as pltpu

LN_EPS = 1e-12  # pytorch_pretrained_bert BertLayerNorm eps

# Tile targets: 256-aligned contraction/output tiles keep the 256-wide MXU of
# v6e/v7x full and are multiples of 128 for v5e; budgets (x + w + acc blocks,
# double-buffered) stay well under v7x's 32 MiB scoped / 64 MiB physical VMEM.
TM_TARGET = 512
TN_TARGET = 256
TK_TARGET = 256
VMEM_LIMIT = 32 * 1024 * 1024


def _pick_tile(dim, target):
    """Largest 'nice' tile <= target that divides dim (falls back to dim)."""
    if dim <= target:
        return dim
    if dim % target == 0:
        return target
    for t in (512, 384, 256, 128):
        if t <= target and dim % t == 0:
            return t
    return dim


# ----------------------------- Pallas kernels -------------------------------

def _linear_kernel(x_ref, w_ref, b_ref, o_ref, acc_ref, *, activation):
    """Tiled x @ w + b with f32 accumulator; optional fused exact GELU."""
    @pl.when(pl.program_id(2) == 0)
    def _():
        acc_ref[...] = jnp.zeros_like(acc_ref)

    acc_ref[...] += jnp.dot(x_ref[...], w_ref[...],
                            preferred_element_type=jnp.float32)

    @pl.when(pl.program_id(2) == pl.num_programs(2) - 1)
    def _():
        y = acc_ref[...] + b_ref[...].astype(jnp.float32)
        if activation == "gelu":
            # exact (erf-based) GELU, as in the original BERT implementation
            y = 0.5 * y * (1.0 + jax.lax.erf(y * (1.0 / math.sqrt(2.0))))
        o_ref[...] = y.astype(o_ref.dtype)


def _linear_add_ln_kernel(x_ref, w_ref, b_ref, r_ref, g_ref, bb_ref,
                          o_ref, acc_ref):
    """Fused (x @ w + b + residual) -> LayerNorm epilogue.

    Grid is (M tiles, K tiles); the output/residual block spans the full
    hidden dim so row statistics can be computed in the finalize branch.
    """
    @pl.when(pl.program_id(1) == 0)
    def _():
        acc_ref[...] = jnp.zeros_like(acc_ref)

    acc_ref[...] += jnp.dot(x_ref[...], w_ref[...],
                            preferred_element_type=jnp.float32)

    @pl.when(pl.program_id(1) == pl.num_programs(1) - 1)
    def _():
        y = (acc_ref[...] + b_ref[...].astype(jnp.float32)
             + r_ref[...].astype(jnp.float32))
        mu = jnp.mean(y, axis=-1, keepdims=True)
        var = jnp.mean((y - mu) ** 2, axis=-1, keepdims=True)
        yn = (y - mu) * jax.lax.rsqrt(var + LN_EPS)
        o_ref[...] = (yn * g_ref[...].astype(jnp.float32)
                      + bb_ref[...].astype(jnp.float32)).astype(o_ref.dtype)


def _layernorm_kernel(x_ref, g_ref, b_ref, o_ref):
    x = x_ref[...].astype(jnp.float32)
    mu = jnp.mean(x, axis=-1, keepdims=True)
    var = jnp.mean((x - mu) ** 2, axis=-1, keepdims=True)
    y = (x - mu) * jax.lax.rsqrt(var + LN_EPS)
    o_ref[...] = (y * g_ref[...].astype(jnp.float32)
                  + b_ref[...].astype(jnp.float32)).astype(o_ref.dtype)


def _attention_kernel(qkv_ref, m_ref, o_ref, *, num_heads, head_dim, hidden,
                      scale):
    """Per-batch softmax attention; heads are split in-kernel (static loop).

    qkv_ref block: [1, S, 3H] (Q | K | V concatenated along the last dim).
    Output block:  [1, S, H] in the original [B, S, H] layout -> no HBM
    split/merge-head transposes.
    """
    mask = m_ref[0].astype(jnp.float32)            # [1, S] additive key mask
    for h in range(num_heads):
        lo = h * head_dim
        q = qkv_ref[0, :, lo:lo + head_dim]                         # [S, dh]
        k = qkv_ref[0, :, hidden + lo:hidden + lo + head_dim]       # [S, dh]
        v = qkv_ref[0, :, 2 * hidden + lo:2 * hidden + lo + head_dim]
        # q @ k^T without materializing a transpose (operands stay in input
        # dtype; accumulation is f32).
        s = jax.lax.dot_general(q, k, (((1,), (1,)), ((), ())),
                                preferred_element_type=jnp.float32)
        s = s * scale + mask
        s = s - jnp.max(s, axis=-1, keepdims=True)
        p = jnp.exp(s)
        p = p * pl.reciprocal(jnp.sum(p, axis=-1, keepdims=True), approx=True)
        ctx = jnp.dot(p.astype(v.dtype), v, preferred_element_type=jnp.float32)
        o_ref[0, :, lo:lo + head_dim] = ctx.astype(o_ref.dtype)


def _comb_kernel(x_ref, w_ref, b_ref, o_ref, *, num_layers):
    """feat_combiner as a VPU weighted sum (contraction depth L is tiny)."""
    y = (b_ref[...].astype(jnp.float32)
         + x_ref[:, 0:1].astype(jnp.float32) * w_ref[0:1, :].astype(jnp.float32))
    for l in range(1, num_layers):
        y = y + (x_ref[:, l:l + 1].astype(jnp.float32)
                 * w_ref[l:l + 1, :].astype(jnp.float32))
    o_ref[...] = y.astype(o_ref.dtype)


# ------------------------------ Pallas wrappers ------------------------------

def pallas_linear(x, w, b, activation=None):
    """x:[M,K] @ w:[K,N] + b:[N], tiled M/N/K grid, optional fused GELU."""
    M, K = x.shape
    N = w.shape[1]
    tm = _pick_tile(M, TM_TARGET)
    tn = _pick_tile(N, TN_TARGET)
    tk = _pick_tile(K, TK_TARGET)
    kern = functools.partial(_linear_kernel, activation=activation)
    return pl.pallas_call(
        kern,
        grid=(M // tm, N // tn, K // tk),
        in_specs=[pl.BlockSpec((tm, tk), lambda i, j, k: (i, k)),
                  pl.BlockSpec((tk, tn), lambda i, j, k: (k, j)),
                  # bias block is independent of k -> stays resident across
                  # the reduction axis.
                  pl.BlockSpec((1, tn), lambda i, j, k: (0, j))],
        out_specs=pl.BlockSpec((tm, tn), lambda i, j, k: (i, j)),
        out_shape=jax.ShapeDtypeStruct((M, N), x.dtype),
        scratch_shapes=[pltpu.VMEM((tm, tn), jnp.float32)],
        compiler_params=pltpu.CompilerParams(
            dimension_semantics=("parallel", "parallel", "arbitrary"),
            vmem_limit_bytes=VMEM_LIMIT),
    )(x, w, b.reshape(1, N))


def pallas_linear_add_layernorm(x, w, b, residual, gamma, beta):
    """Fused (x @ w + b + residual) followed by LayerNorm over the last dim."""
    M, K = x.shape
    N = w.shape[1]
    tm = _pick_tile(M, TM_TARGET)
    tk = _pick_tile(K, TK_TARGET)
    return pl.pallas_call(
        _linear_add_ln_kernel,
        grid=(M // tm, K // tk),
        in_specs=[pl.BlockSpec((tm, tk), lambda i, k: (i, k)),
                  pl.BlockSpec((tk, N), lambda i, k: (k, 0)),
                  pl.BlockSpec((1, N), lambda i, k: (0, 0)),
                  pl.BlockSpec((tm, N), lambda i, k: (i, 0)),   # residual
                  pl.BlockSpec((1, N), lambda i, k: (0, 0)),    # gamma
                  pl.BlockSpec((1, N), lambda i, k: (0, 0))],   # beta
        out_specs=pl.BlockSpec((tm, N), lambda i, k: (i, 0)),
        out_shape=jax.ShapeDtypeStruct((M, N), x.dtype),
        scratch_shapes=[pltpu.VMEM((tm, N), jnp.float32)],
        compiler_params=pltpu.CompilerParams(
            dimension_semantics=("parallel", "arbitrary"),
            vmem_limit_bytes=VMEM_LIMIT),
    )(x, w, b.reshape(1, N), residual, gamma.reshape(1, N), beta.reshape(1, N))


def pallas_layernorm(x, gamma, beta):
    M, H = x.shape
    tm = _pick_tile(M, TM_TARGET)
    return pl.pallas_call(
        _layernorm_kernel,
        grid=(M // tm,),
        in_specs=[pl.BlockSpec((tm, H), lambda i: (i, 0)),
                  pl.BlockSpec((1, H), lambda i: (0, 0)),
                  pl.BlockSpec((1, H), lambda i: (0, 0))],
        out_specs=pl.BlockSpec((tm, H), lambda i: (i, 0)),
        out_shape=jax.ShapeDtypeStruct((M, H), x.dtype),
        compiler_params=pltpu.CompilerParams(
            dimension_semantics=("parallel",),
            vmem_limit_bytes=VMEM_LIMIT),
    )(x, gamma.reshape(1, H), beta.reshape(1, H))


def pallas_attention(qkv, add_mask, num_heads, head_dim, hidden, scale):
    """qkv: [B, S, 3H]; add_mask: [B, 1, S] additive (-10000 for pad)."""
    B, S, H3 = qkv.shape
    kern = functools.partial(_attention_kernel, num_heads=num_heads,
                             head_dim=head_dim, hidden=hidden, scale=scale)
    return pl.pallas_call(
        kern,
        grid=(B,),
        in_specs=[pl.BlockSpec((1, S, H3), lambda b: (b, 0, 0)),
                  pl.BlockSpec((1, 1, S), lambda b: (b, 0, 0))],
        out_specs=pl.BlockSpec((1, S, hidden), lambda b: (b, 0, 0)),
        out_shape=jax.ShapeDtypeStruct((B, S, hidden), qkv.dtype),
        compiler_params=pltpu.CompilerParams(
            dimension_semantics=("parallel",),
            vmem_limit_bytes=VMEM_LIMIT),
    )(qkv, add_mask)


def pallas_feat_combiner(x, w, b):
    """x:[M,L] (L small) -> x @ w + b via VPU weighted sum, not the MXU."""
    M, L = x.shape
    N = w.shape[1]
    tm = _pick_tile(M, TM_TARGET)
    kern = functools.partial(_comb_kernel, num_layers=L)
    return pl.pallas_call(
        kern,
        grid=(M // tm,),
        in_specs=[pl.BlockSpec((tm, L), lambda i: (i, 0)),
                  pl.BlockSpec((L, N), lambda i: (0, 0)),
                  pl.BlockSpec((1, N), lambda i: (0, 0))],
        out_specs=pl.BlockSpec((tm, N), lambda i: (i, 0)),
        out_shape=jax.ShapeDtypeStruct((M, N), x.dtype),
        compiler_params=pltpu.CompilerParams(
            dimension_semantics=("parallel",),
            vmem_limit_bytes=VMEM_LIMIT),
    )(x, w, b.reshape(1, N))


# --------------------------- synthetic BERT model ---------------------------

def init_params(key, cfg, use_combination_feat, num_feat_layers):
    H, I = cfg["hidden_size"], cfg["intermediate_size"]

    def nrm(k, shape):
        return 0.02 * jax.random.normal(k, shape, dtype=jnp.float32)

    keys = iter(jax.random.split(key, 8 + 8 * cfg["num_layers"]))
    params = {
        "word_emb": nrm(next(keys), (cfg["vocab_size"], H)),
        "pos_emb": nrm(next(keys), (cfg["max_position"], H)),
        "type_emb": nrm(next(keys), (cfg["type_vocab_size"], H)),
        "emb_ln_g": jnp.ones((H,), jnp.float32),
        "emb_ln_b": jnp.zeros((H,), jnp.float32),
        "layers": [],
    }
    for _ in range(cfg["num_layers"]):
        lp = {
            # fused Q|K|V projection weights: [H, 3H]
            "qkv_w": nrm(next(keys), (H, 3 * H)),
            "qkv_b": jnp.zeros((3 * H,), jnp.float32),
            "ao_w": nrm(next(keys), (H, H)), "ao_b": jnp.zeros((H,), jnp.float32),
            "ln1_g": jnp.ones((H,), jnp.float32), "ln1_b": jnp.zeros((H,), jnp.float32),
            "i_w": nrm(next(keys), (H, I)), "i_b": jnp.zeros((I,), jnp.float32),
            "o_w": nrm(next(keys), (I, H)), "o_b": jnp.zeros((H,), jnp.float32),
            "ln2_g": jnp.ones((H,), jnp.float32), "ln2_b": jnp.zeros((H,), jnp.float32),
        }
        params["layers"].append(lp)
    if use_combination_feat:
        params["comb_w"] = nrm(next(keys), (num_feat_layers, H))
        params["comb_b"] = jnp.zeros((H,), jnp.float32)
    return params


def encoder_layer(h, p, add_mask, num_heads):
    B, S, H = h.shape
    dh = H // num_heads
    x2 = h.reshape(B * S, H)

    # Fused QKV projection (one matmul, x read once).
    qkv = pallas_linear(x2, p["qkv_w"], p["qkv_b"])                 # [B*S, 3H]

    # Attention: head split happens inside the kernel -> no HBM transposes.
    ctx = pallas_attention(qkv.reshape(B, S, 3 * H), add_mask,
                           num_heads, dh, H, 1.0 / math.sqrt(dh))   # [B, S, H]

    # Output projection + residual + LayerNorm fused into one kernel.
    attn = pallas_linear_add_layernorm(ctx.reshape(B * S, H),
                                       p["ao_w"], p["ao_b"],
                                       x2, p["ln1_g"], p["ln1_b"])

    # FFN: intermediate matmul with fused GELU, output matmul with fused
    # residual + LayerNorm epilogue.
    inter = pallas_linear(attn, p["i_w"], p["i_b"], activation="gelu")
    out = pallas_linear_add_layernorm(inter, p["o_w"], p["o_b"],
                                      attn, p["ln2_g"], p["ln2_b"])
    return out.reshape(B, S, H)


def bert_encoder(params, input_ids, token_type_ids, attention_mask, cfg):
    B, S = input_ids.shape
    H = cfg["hidden_size"]

    # embedding gather is glue (plain JAX), layernorm is a Pallas kernel
    emb = (params["word_emb"][input_ids]
           + params["pos_emb"][jnp.arange(S)][None, :, :]
           + params["type_emb"][token_type_ids])
    h = pallas_layernorm(emb.reshape(B * S, H),
                         params["emb_ln_g"], params["emb_ln_b"]).reshape(B, S, H)

    # (1 - mask) * -10000 additive attention mask, shape [B, 1, S]
    add_mask = ((1.0 - attention_mask.astype(jnp.float32)) * -10000.0).reshape(B, 1, S)

    all_encoder_layers = []
    for lp in params["layers"]:
        h = encoder_layer(h, lp, add_mask, cfg["num_heads"])
        all_encoder_layers.append(h)
    return all_encoder_layers


def bert_feat_extractor_forward(params, args, cfg,
                                input_ids, token_type_ids, attention_mask):
    all_encoder_layers = bert_encoder(params, input_ids, token_type_ids,
                                      attention_mask, cfg)
    feat_layers = [int(x) for x in args.layers.split("_")]
    selected = [all_encoder_layers[idx] for idx in feat_layers]
    feats = jnp.stack(selected, axis=0)                 # [L, B, S, H]

    if args.use_combination_feat:
        x = jnp.transpose(feats, (1, 2, 3, 0))          # [B, S, H, L]
        B, S, H, L = x.shape
        y = pallas_feat_combiner(x.reshape(B * S * H, L),
                                 params["comb_w"], params["comb_b"])
        return y.reshape(B, S, H, args.bert_hidden_size)
    else:
        x = jnp.transpose(feats, (1, 2, 0, 3))          # [B, S, L, H]
        x = x[:, 1:, :, :]                              # drop [CLS] position
        return x.reshape(x.shape[0], x.shape[1], -1)    # [B, S-1, L*H]


# ----------------------------------- main ------------------------------------

if __name__ == "__main__":
    cfg = dict(vocab_size=100, hidden_size=32, num_layers=4, num_heads=4,
               intermediate_size=64, max_position=32, type_vocab_size=2)

    B, S = 2, 8
    key = jax.random.PRNGKey(0)
    k_ids, k_par = jax.random.split(key)

    input_ids = jax.random.randint(k_ids, (B, S), 0, cfg["vocab_size"], dtype=jnp.int32)
    token_type_ids = jnp.concatenate(
        [jnp.zeros((B, S // 2), jnp.int32), jnp.ones((B, S - S // 2), jnp.int32)], axis=1)
    attention_mask = jnp.ones((B, S), jnp.int32).at[1, -2:].set(0)  # pad last 2 of batch 1

    feat_layer_str = "-1_-2"
    num_feat_layers = len(feat_layer_str.split("_"))

    # Branch 1: use_combination_feat=True  -> output [B, S, H, H]
    args_comb = SimpleNamespace(layers=feat_layer_str, use_combination_feat=True,
                                bert_hidden_size=cfg["hidden_size"],
                                tuning_feat_extract=False, bert_model="synthetic")
    params_comb = init_params(k_par, cfg, True, num_feat_layers)
    out_comb = bert_feat_extractor_forward(params_comb, args_comb, cfg,
                                           input_ids, token_type_ids, attention_mask)

    # Branch 2: use_combination_feat=False -> output [B, S-1, L*H]
    args_cat = SimpleNamespace(layers=feat_layer_str, use_combination_feat=False,
                               bert_hidden_size=cfg["hidden_size"],
                               tuning_feat_extract=False, bert_model="synthetic")
    params_cat = init_params(k_par, cfg, False, num_feat_layers)
    out_cat = bert_feat_extractor_forward(params_cat, args_cat, cfg,
                                          input_ids, token_type_ids, attention_mask)

    jax.block_until_ready((out_comb, out_cat))
    assert out_comb.shape == (B, S, cfg["hidden_size"], cfg["hidden_size"])
    assert out_cat.shape == (B, S - 1, num_feat_layers * cfg["hidden_size"])
    assert bool(jnp.all(jnp.isfinite(out_comb))) and bool(jnp.all(jnp.isfinite(out_cat)))
    print("KERNEL_OK")
</pallas_src>

<mosaic_0001>
module attributes {stable_mosaic.version = 11 : i64} {
  func.func @_layernorm_kernel(%arg0: i32, %arg1: memref<16x32xf32, #tpu.memory_space<vmem>>, %arg2: memref<1x32xf32, #tpu.memory_space<vmem>>, %arg3: memref<1x32xf32, #tpu.memory_space<vmem>>, %arg4: memref<16x32xf32, #tpu.memory_space<vmem>>) attributes {dimension_semantics = [#tpu.dimension_semantics<parallel>], iteration_bounds = array<i64: 1>, scalar_prefetch = 0 : i64, scratch_operands = 0 : i64, tpu.core_type = #tpu.core_type<tc>, window_params = [{transform_indices = @transform_0, window_bounds = array<i64: 16, 32>}, {pipeline_mode = #tpu.pipeline_mode<synchronous>, transform_indices = @transform_1, window_bounds = array<i64: 1, 32>}, {pipeline_mode = #tpu.pipeline_mode<synchronous>, transform_indices = @transform_2, window_bounds = array<i64: 1, 32>}, {transform_indices = @transform_3, window_bounds = array<i64: 16, 32>}]} {
    %c0 = arith.constant 0 : index
    %c0_0 = arith.constant 0 : index
    %0 = vector.load %arg1[%c0, %c0_0] : memref<16x32xf32, #tpu.memory_space<vmem>>, vector<16x32xf32>
    %cst = arith.constant dense<0.000000e+00> : vector<16xf32>
    %1 = vector.multi_reduction <add>, %0, %cst [1] : vector<16x32xf32> to vector<16xf32>
    %2 = vector.shape_cast %1 : vector<16xf32> to vector<16x1xf32>
    %cst_1 = arith.constant 3.200000e+01 : f32
    %3 = vector.broadcast %cst_1 : f32 to vector<16x1xf32>
    %4 = arith.divf %2, %3 : vector<16x1xf32>
    %5 = vector.broadcast %4 : vector<16x1xf32> to vector<16x32xf32>
    %6 = arith.subf %0, %5 : vector<16x32xf32>
    %7 = arith.mulf %6, %6 : vector<16x32xf32>
    %cst_2 = arith.constant dense<0.000000e+00> : vector<16xf32>
    %8 = vector.multi_reduction <add>, %7, %cst_2 [1] : vector<16x32xf32> to vector<16xf32>
    %9 = vector.shape_cast %8 : vector<16xf32> to vector<16x1xf32>
    %cst_3 = arith.constant 3.200000e+01 : f32
    %10 = vector.broadcast %cst_3 : f32 to vector<16x1xf32>
    %11 = arith.divf %9, %10 : vector<16x1xf32>
    %12 = vector.broadcast %4 : vector<16x1xf32> to vector<16x32xf32>
    %13 = arith.subf %0, %12 : vector<16x32xf32>
    %cst_4 = arith.constant 9.99999996E-13 : f32
    %14 = vector.broadcast %cst_4 : f32 to vector<16x1xf32>
    %15 = arith.addf %11, %14 : vector<16x1xf32>
    %16 = math.rsqrt %15 : vector<16x1xf32>
    %17 = vector.broadcast %16 : vector<16x1xf32> to vector<16x32xf32>
    %18 = arith.mulf %13, %17 : vector<16x32xf32>
    %c0_5 = arith.constant 0 : index
    %c0_6 = arith.constant 0 : index
    %19 = vector.load %arg2[%c0_5, %c0_6] : memref<1x32xf32, #tpu.memory_space<vmem>>, vector<1x32xf32>
    %20 = vector.broadcast %19 : vector<1x32xf32> to vector<16x32xf32>
    %21 = arith.mulf %18, %20 : vector<16x32xf32>
    %c0_7 = arith.constant 0 : index
    %c0_8 = arith.constant 0 : index
    %22 = vector.load %arg3[%c0_7, %c0_8] : memref<1x32xf32, #tpu.memory_space<vmem>>, vector<1x32xf32>
    %23 = vector.broadcast %22 : vector<1x32xf32> to vector<16x32xf32>
    %24 = arith.addf %21, %23 : vector<16x32xf32>
    %c0_9 = arith.constant 0 : index
    %c0_10 = arith.constant 0 : index
    %25 = vector.load %arg4[%c0_9, %c0_10] : memref<16x32xf32, #tpu.memory_space<vmem>>, vector<16x32xf32>
    tpu.vector_store %arg4[%c0_9, %c0_10], %24 {strides = array<i32>} : memref<16x32xf32, #tpu.memory_space<vmem>>, vector<16x32xf32>,
    return
  }
  func.func @transform_0(%arg0: i32) -> (i32, i32) {
    %c0_i32 = arith.constant 0 : i32
    %c0_i32_0 = arith.constant 0 : i32
    return %arg0, %c0_i32 : i32, i32
  }
  func.func @transform_1(%arg0: i32) -> (i32, i32) {
    %c0_i32 = arith.constant 0 : i32
    %c0_i32_0 = arith.constant 0 : i32
    %c0_i32_1 = arith.constant 0 : i32
    return %c0_i32, %c0_i32_0 : i32, i32
  }
  func.func @transform_2(%arg0: i32) -> (i32, i32) {
    %c0_i32 = arith.constant 0 : i32
    %c0_i32_0 = arith.constant 0 : i32
    %c0_i32_1 = arith.constant 0 : i32
    return %c0_i32, %c0_i32_0 : i32, i32
  }
  func.func @transform_3(%arg0: i32) -> (i32, i32) {
    %c0_i32 = arith.constant 0 : i32
    %c0_i32_0 = arith.constant 0 : i32
    return %arg0, %c0_i32 : i32, i32
  }
}

</mosaic_0001>

<bundles_post_ra>
// kernel: tpu_custom_call.1
= control target key start
LH: loop header
LB: loop body
LE: loop exit
PB: predicated region body
PF: predicated region fallthrough
CT: control target
= control target key end

     0   :  { %8 = vsyncpa [#allocation3], 0  ;;  %s198_s0 = inlined_call_operand.hbm [shape: f32[16,32], index: 0, kind: input, shape index: {}]   ;;  %s199_s1 = inlined_call_operand.vmem [shape: f32[1,32], index: 1, kind: input, shape index: {}]   ;;  %s200_s2 = inlined_call_operand.vmem [shape: f32[1,32], index: 2, kind: input, shape index: {}]   ;;  %s201_s3 = inlined_call_operand.hbm [shape: f32[16,32], index: 3, kind: output, shape index: {}]  }
   0x1   :  { %9 = vsyncpa [#allocation4], 0  ;;  %s150_s12 = smov [#allocation2]  }
   0x2   :  { %s15_s13 = sshll.u32 %s150_s12, 4  ;;  %s16_s13 = int_to_ptr.vmem [resolvable:$true] %s15_s13 }
   0x3   :  { %s114_s14 = scalar_lea.vmem %s16_s13, 256  ;;  %p119_p1 = scmp.lt.s32.totalorder %s16_s13, %s16_s13 }
   0x4   :  { %p115_p0 = scmp.ne.s32.totalorder %s16_s13, %s114_s14  ;;  %p120_p2 = scmp.lt.s32.totalorder %s114_s14, %s114_s14 }
   0x6   :  { %p121_p3 = por %p120_p2, %p119_p1 }
   0x8   :  { %p122_p4 = pnand %p121_p3, %p115_p0 }
   0xa   :  { %125 = shalt.err (!%p122_p4)
}
   0xb   :  { %s151_s15 = smov 128   ;;  %s152_s16 = smov 8  }
   0xc   :  { %21 = dma.hbm_to_vmem [thread:$0]  %s198_s0, 256, %s16_s13, [#allocation3], %s151_s15, %s151_s15, %s152_s16  }
   0xd   :  { %146 = dma.done.wait [#allocation3], 256  }
   0xe   :  { %147 = vsyncadd [#allocation3], 4294967040  ;;  %vm31_vm0 = vcmask 261120   ;;  %v29_v0 = vld [vmem:[#allocation2] sm:$0xff]  ;;  %v30_v1 = vld [vmem:[#allocation2 + $0x8] sm:$0xff]  ;;  %s153_s22 = smov [#allocation5]  }
   0xf   :  { %v32_v2 = vsel %vm31_vm0, %v29_v0, 0.0  ;;  %v35_v3 = vsel %vm31_vm0, %v30_v1, 0.0  ;;  %v96_v21 = vld [vmem:[%s199_s1] ss:$0 sm:$0xff]  ;;  %s84_s23 = sshll.u32 %s153_s22, 4  ;;  %s85_s23 = int_to_ptr.vmem [resolvable:$true] %s84_s23 }
  0x10   :  { %33 = vadd.xlane.f32.xlu0 %v32_v2  ;;  %v97_v23 = vld [vmem:[%s200_s2] ss:$0 sm:$0xff]  ;;  %s126_s24 = scalar_lea.vmem %s85_s23, 256  ;;  %p131_p6 = scmp.lt.s32.totalorder %s85_s23, %s85_s23 }
  0x11   :  { %p127_p5 = scmp.ne.s32.totalorder %s85_s23, %s126_s24  ;;  %p132_p7 = scmp.lt.s32.totalorder %s126_s24, %s126_s24 }
  0x13   :  { %p133_p8 = por %p132_p7, %p131_p6 }
  0x14   :  { %36 = vadd.xlane.f32.xlu0 %v35_v3 }
  0x15   :  { %p134_p9 = pnand %p133_p8, %p127_p5 }
  0x99   :  { %v34_v4 = vpop.xlane.xlu0 %33 }
  0x9a   :  { %v39_v5 = vmul.f32 0.03125, %v34_v4 }
  0x9c   :  { %v41_v6 = vsub.f32 %v29_v0, %v39_v5 }
  0x9d   :  { %v37_v7 = vpop.xlane.xlu0 %36 }
  0x9e   :  { %v40_v8 = vmul.f32 0.03125, %v37_v7  ;;  %v43_v9 = vmul.f32 %v41_v6, %v41_v6 }
  0xa0   :  { %v42_v10 = vsub.f32 %v30_v1, %v40_v8  ;;  %v45_v11 = vsel %vm31_vm0, %v43_v9, 0.0 }
  0xa1   :  { %46 = vadd.xlane.f32.xlu1 %v45_v11 }
  0xa2   :  { %v44_v12 = vmul.f32 %v42_v10, %v42_v10 }
  0xa4   :  { %v48_v13 = vsel %vm31_vm0, %v44_v12, 0.0 }
  0xa5   :  { %49 = vadd.xlane.f32.xlu1 %v48_v13 }
 0x12a   :  { %v47_v14 = vpop.xlane.xlu1 %46 }
 0x12b   :  { %v51_v15 = vmul.f32 0.03125, %v47_v14 }
 0x12d   :  { %v53_v16 = vadd.f32 1e-12, %v51_v15 }
 0x12e   :  { %v50_v17 = vpop.xlane.xlu1 %49 }
 0x12f   :  { %102 = vrsqrt.f32 %v53_v16  ;;  %v52_v18 = vmul.f32 0.03125, %v50_v17 }
 0x131   :  { %v54_v19 = vadd.f32 1e-12, %v52_v18 }
 0x133   :  { %104 = vrsqrt.f32 %v54_v19 }
 0x13c   :  { %v103_v20 = vpop.eup %102 }
 0x13d   :  { %v57_v22 = vmul.f32 %v103_v20, %v41_v6 }
 0x13f   :  { %v66_v24 = vmul.f32 %v96_v21, %v57_v22 }
 0x140   :  { %v105_v25 = vpop.eup %104 }
 0x141   :  { %v58_v26 = vmul.f32 %v105_v25, %v42_v10  ;;  %v75_v27 = vadd.f32 %v97_v23, %v66_v24 }
 0x143   :  { %v67_v28 = vmul.f32 %v96_v21, %v58_v26  ;;  %77 = vst.msk [vmem:[#allocation5] sm:$0xff] %vm31_vm0, %v75_v27 }
 0x145   :  { %v76_v29 = vadd.f32 %v97_v23, %v67_v28 }
 0x147   :  { %78 = vst.msk [vmem:[#allocation5 + $0x8] sm:$0xff] %vm31_vm0, %v76_v29 }
 0x148   :  { %137 = shalt.err (!%p134_p9)
}
 0x149   :  { %90 = dma.vmem_to_hbm [thread:$0]  %s85_s23, 256, %s201_s3, [#allocation4], %s151_s15, %s151_s15, %s152_s16  }
 0x14a   :  { %148 = dma.done.wait [#allocation4], 256  }
 0x14b   :  { %149 = vsyncadd [#allocation4], 4294967040 }
 0x14c   :  { %94 = vsyncpa [#allocation3], 1 }
 0x14d   :  { %95 = vsyncpa [#allocation4], 1 }

</bundles_post_ra>
